<compile_context>
chip_gen: v7x
topology: tpu7x:2x2x1
jax: 0.10.0
libtpu: 0.0.40
codegen_flags: <defaults>
</compile_context>

<pallas_src>
import functools
import math

import jax
import jax.numpy as jnp
from jax.experimental import pallas as pl
from jax.experimental.pallas import tpu as pltpu


# ---------------------------------------------------------------------------
# Kernel. Block layout (channels-first, HW on the lane axis):
#   sigma : (B,)         SMEM, read per batch element
#   x     : (bblk, C, HW)
#   w1    : (Chid, C)    W1^T  (unbatched, VMEM-resident)
#   b1,wt : (Chid, 1)
#   w2    : (C, Chid)    W2^T
#   b2    : (C, 1)
#   out   : (bblk, C, HW)
# ---------------------------------------------------------------------------
def wrap_eps_kernel(sigma_ref, x_ref, w1_ref, b1_ref, wt_ref, w2_ref, b2_ref,
                    o_ref, *, num_steps, beta_min, beta_d):
    nb = x_ref.shape[0]           # batch elements handled by this grid step
    C = x_ref.shape[1]
    pid = pl.program_id(0)

    w1 = w1_ref[...]              # (Chid, C)
    b1 = b1_ref[...]              # (Chid, 1)
    wt = wt_ref[...]              # (Chid, 1)
    w2 = w2_ref[...]              # (C, Chid)
    b2 = b2_ref[...]              # (C, 1)

    for i in range(nb):           # static unroll (nb is 1 or B, both tiny)
        # --- VPSDE coefficients, computed in-kernel from the SMEM sigma. ---
        sig = sigma_ref[pid * nb + i]                     # scalar from SMEM
        sig_v = jnp.full((1, 1), sig, jnp.float32)        # tiny vector for EUP math
        sig2 = sig_v * sig_v
        c_in = jax.lax.rsqrt(sig2 + 1.0)                  # 1/sqrt(sigma^2+1)
        c_out = -sig_v
        sigma_inv = (jnp.sqrt(beta_min * beta_min
                              + 2.0 * beta_d * jnp.log(sig2 + 1.0))
                     - beta_min) / beta_d
        c_noise = float(num_steps - 1) * sigma_inv        # (1, 1)

        x = x_ref[i]                                      # (C, HW)

        # --- First layer: K = C = 4 -> VPU broadcast multiply-adds. ---
        w1s = c_in * w1                                   # (Chid, C), tiny scale
        acc = w1s[:, 0:1] * x[0:1, :]                     # (Chid, HW)
        for c in range(1, C):
            acc = acc + w1s[:, c:c + 1] * x[c:c + 1, :]
        h = acc + (b1 + c_noise * wt)                     # conditioned bias

        # --- SiLU with exact tanh-based sigmoid (single EUP op/elem). ---
        h = h * (0.5 + 0.5 * jnp.tanh(0.5 * h))

        # --- Second layer: K = Chid on the MXU; fold c_out into the weights. ---
        w2s = c_out * w2                                  # (C, Chid)
        f = jnp.dot(w2s, h, preferred_element_type=jnp.float32)   # (C, HW)

        # D_x = x + c_out * (F + b2)   (c_skip == 1 for VPSDE)
        o_ref[i] = x + f + c_out * b2


def _batch_parallel_by_default():
    # v7x has 2 TensorCores per chip: keep B as a parallel grid axis there.
    # Single-TC chips (v5e/v6e) collapse to one grid step (less per-step overhead).
    try:
        kind = jax.devices()[0].device_kind.lower()
    except Exception:
        return False
    return ("v7" in kind) or ("7x" in kind)


# ---------------------------------------------------------------------------
# Python wrapper: free NCHW -> (B, C, HW) view, unbatched tiny weights, one
# pallas_call. No host-side coefficient folding.
# ---------------------------------------------------------------------------
def wrap_eps_net_forward(x_nchw, sigma, params, num_steps=18,
                         beta_min=0.1, beta_max=20.0, parallel_batch=None):
    """x_nchw: (B, C, H, W) f32, sigma: (B,) f32."""
    beta_d = beta_max - beta_min
    B, C, H, W = x_nchw.shape
    HW = H * W
    Chid = params["w1"].shape[1]

    if parallel_batch is None:
        parallel_batch = _batch_parallel_by_default()
    bblk = 1 if parallel_batch else B                     # batch per grid step
    grid = (B // bblk,)

    sigma = sigma.reshape(B).astype(jnp.float32)
    x = x_nchw.reshape(B, C, HW).astype(jnp.float32)      # free layout view

    # Unbatched tiny eps-model weights, laid out for the channels-first kernel.
    w1_t = params["w1"].T.astype(jnp.float32)             # (Chid, C)
    w2_t = params["w2"].T.astype(jnp.float32)             # (C, Chid)
    b1 = params["b1"].reshape(Chid, 1).astype(jnp.float32)
    wt = params["wt"].reshape(Chid, 1).astype(jnp.float32)
    b2 = params["b2"].reshape(C, 1).astype(jnp.float32)

    kernel = functools.partial(wrap_eps_kernel, num_steps=num_steps,
                               beta_min=beta_min, beta_d=beta_d)

    out = pl.pallas_call(
        kernel,
        out_shape=jax.ShapeDtypeStruct((B, C, HW), jnp.float32),
        grid=grid,
        in_specs=[
            pl.BlockSpec(memory_space=pltpu.MemorySpace.SMEM),   # sigma (B,)
            pl.BlockSpec((bblk, C, HW), lambda b: (b, 0, 0)),    # x slab
            pl.BlockSpec((Chid, C), lambda b: (0, 0)),           # W1^T (resident)
            pl.BlockSpec((Chid, 1), lambda b: (0, 0)),           # b1   (resident)
            pl.BlockSpec((Chid, 1), lambda b: (0, 0)),           # wt   (resident)
            pl.BlockSpec((C, Chid), lambda b: (0, 0)),           # W2^T (resident)
            pl.BlockSpec((C, 1), lambda b: (0, 0)),              # b2   (resident)
        ],
        out_specs=pl.BlockSpec((bblk, C, HW), lambda b: (b, 0, 0)),
        compiler_params=pltpu.CompilerParams(
            dimension_semantics=("parallel",)),
    )(sigma, x, w1_t, b1, wt, w2_t, b2)

    return out.reshape(B, C, H, W)


# Pure-JAX reference (exact sigmoid) for sanity checking.
def reference_forward(x_nchw, sigma, params, num_steps=18,
                      beta_min=0.1, beta_max=20.0):
    beta_d = beta_max - beta_min
    B = x_nchw.shape[0]
    sig = sigma.reshape(B, 1, 1, 1).astype(jnp.float32)
    c_in = 1.0 / jnp.sqrt(sig ** 2 + 1.0)
    c_out = -sig
    sigma_inv = (jnp.sqrt(beta_min ** 2 + 2.0 * beta_d * jnp.log(1.0 + sig ** 2))
                 - beta_min) / beta_d
    c_noise = (num_steps - 1) * sigma_inv

    x_in = c_in * x_nchw                                   # NCHW
    x_flat = jnp.transpose(x_in, (0, 2, 3, 1))             # NHWC
    h = jnp.einsum("bhwc,cd->bhwd", x_flat, params["w1"]) + params["b1"]
    h = h + c_noise.reshape(B, 1, 1, 1) * params["wt"].reshape(1, 1, 1, -1)
    h = h * jax.nn.sigmoid(h)
    f = jnp.einsum("bhwd,dc->bhwc", h, params["w2"]) + params["b2"]
    f = jnp.transpose(f, (0, 3, 1, 2))                     # back to NCHW
    return x_nchw + c_out * f


if __name__ == "__main__":
    key = jax.random.PRNGKey(0)
    B, C, H, W = 2, 4, 16, 16
    Chid = 32
    num_steps, beta_min, beta_max = 18, 0.1, 20.0

    k = jax.random.split(key, 7)
    x = jax.random.normal(k[0], (B, C, H, W), dtype=jnp.float32)
    sigma = jax.random.uniform(k[1], (B,), minval=0.05, maxval=2.0,
                               dtype=jnp.float32)

    # Deterministic synthetic eps_model parameters.
    # TODO(synk): the PyTorch module wraps an arbitrary eps_model nn.Module;
    # here it is synthesized as a 1x1-conv MLP with scalar time conditioning.
    params = {
        "w1": (jax.random.normal(k[2], (C, Chid), jnp.float32)
               / math.sqrt(C)),
        "b1": jnp.zeros((1, Chid), jnp.float32),
        "wt": jax.random.normal(k[3], (1, Chid), jnp.float32) * 0.1,
        "w2": (jax.random.normal(k[4], (Chid, C), jnp.float32)
               / math.sqrt(Chid)),
        "b2": jnp.zeros((1, C), jnp.float32),
    }

    out = wrap_eps_net_forward(x, sigma, params,
                               num_steps=num_steps,
                               beta_min=beta_min, beta_max=beta_max)
    out = jax.block_until_ready(out)

    ref = reference_forward(x, sigma, params,
                            num_steps=num_steps,
                            beta_min=beta_min, beta_max=beta_max)
    assert out.shape == (B, C, H, W)
    assert jnp.allclose(out, ref, atol=2e-3, rtol=2e-3)

    print("KERNEL_OK")
</pallas_src>

<mosaic_0001>
module attributes {stable_mosaic.version = 11 : i64} {
  func.func @wrap_eps_kernel(%arg0: i32, %arg1: memref<2xf32, #tpu.memory_space<smem>>, %arg2: memref<2x4x256xf32, #tpu.memory_space<vmem>>, %arg3: memref<32x4xf32, #tpu.memory_space<vmem>>, %arg4: memref<32x1xf32, #tpu.memory_space<vmem>>, %arg5: memref<32x1xf32, #tpu.memory_space<vmem>>, %arg6: memref<4x32xf32, #tpu.memory_space<vmem>>, %arg7: memref<4x1xf32, #tpu.memory_space<vmem>>, %arg8: memref<2x4x256xf32, #tpu.memory_space<vmem>>) attributes {dimension_semantics = [#tpu.dimension_semantics<parallel>], iteration_bounds = array<i64: 1>, scalar_prefetch = 0 : i64, scratch_operands = 0 : i64, tpu.core_type = #tpu.core_type<tc>, window_params = [{transform_indices = @transform_0, window_bounds = array<i64: 2>}, {transform_indices = @transform_1, window_bounds = array<i64: 2, 4, 256>}, {pipeline_mode = #tpu.pipeline_mode<synchronous>, transform_indices = @transform_2, window_bounds = array<i64: 32, 4>}, {pipeline_mode = #tpu.pipeline_mode<synchronous>, transform_indices = @transform_3, window_bounds = array<i64: 32, 1>}, {pipeline_mode = #tpu.pipeline_mode<synchronous>, transform_indices = @transform_4, window_bounds = array<i64: 32, 1>}, {pipeline_mode = #tpu.pipeline_mode<synchronous>, transform_indices = @transform_5, window_bounds = array<i64: 4, 32>}, {pipeline_mode = #tpu.pipeline_mode<synchronous>, transform_indices = @transform_6, window_bounds = array<i64: 4, 1>}, {transform_indices = @transform_7, window_bounds = array<i64: 2, 4, 256>}]} {
    %c0 = arith.constant 0 : index
    %c0_0 = arith.constant 0 : index
    %0 = vector.load %arg3[%c0, %c0_0] : memref<32x4xf32, #tpu.memory_space<vmem>>, vector<32x4xf32>
    %c0_1 = arith.constant 0 : index
    %c0_2 = arith.constant 0 : index
    %1 = vector.load %arg4[%c0_1, %c0_2] : memref<32x1xf32, #tpu.memory_space<vmem>>, vector<32x1xf32>
    %c0_3 = arith.constant 0 : index
    %c0_4 = arith.constant 0 : index
    %2 = vector.load %arg5[%c0_3, %c0_4] : memref<32x1xf32, #tpu.memory_space<vmem>>, vector<32x1xf32>
    %c0_5 = arith.constant 0 : index
    %c0_6 = arith.constant 0 : index
    %3 = vector.load %arg6[%c0_5, %c0_6] : memref<4x32xf32, #tpu.memory_space<vmem>>, vector<4x32xf32>
    %c0_7 = arith.constant 0 : index
    %c0_8 = arith.constant 0 : index
    %4 = vector.load %arg7[%c0_7, %c0_8] : memref<4x1xf32, #tpu.memory_space<vmem>>, vector<4x1xf32>
    %c2_i32 = arith.constant 2 : i32
    %5 = arith.muli %arg0, %c2_i32 : i32
    %c0_i32 = arith.constant 0 : i32
    %6 = arith.addi %5, %c0_i32 : i32
    %7 = arith.index_cast %6 : i32 to index
    %8 = memref.load %arg1[%7] : memref<2xf32, #tpu.memory_space<smem>>
    %9 = vector.broadcast %8 : f32 to vector<1x1xf32>
    %10 = arith.mulf %9, %9 : vector<1x1xf32>
    %cst = arith.constant 1.000000e+00 : f32
    %11 = vector.broadcast %cst : f32 to vector<1x1xf32>
    %12 = arith.addf %10, %11 : vector<1x1xf32>
    %13 = math.rsqrt %12 : vector<1x1xf32>
    %cst_9 = arith.constant 0.000000e+00 : f32
    %14 = vector.broadcast %cst_9 : f32 to vector<1x1xf32>
    %15 = arith.subf %14, %9 : vector<1x1xf32>
    %cst_10 = arith.constant 1.000000e+00 : f32
    %16 = vector.broadcast %cst_10 : f32 to vector<1x1xf32>
    %17 = arith.addf %10, %16 : vector<1x1xf32>
    %18 = math.log %17 : vector<1x1xf32>
    %cst_11 = arith.constant 3.980000e+01 : f32
    %19 = vector.broadcast %cst_11 : f32 to vector<1x1xf32>
    %20 = arith.mulf %19, %18 : vector<1x1xf32>
    %cst_12 = arith.constant 0.00999999977 : f32
    %21 = vector.broadcast %cst_12 : f32 to vector<1x1xf32>
    %22 = arith.addf %21, %20 : vector<1x1xf32>
    %23 = math.sqrt %22 : vector<1x1xf32>
    %cst_13 = arith.constant 1.000000e-01 : f32
    %24 = vector.broadcast %cst_13 : f32 to vector<1x1xf32>
    %25 = arith.subf %23, %24 : vector<1x1xf32>
    %cst_14 = arith.constant 1.990000e+01 : f32
    %26 = vector.broadcast %cst_14 : f32 to vector<1x1xf32>
    %27 = arith.divf %25, %26 : vector<1x1xf32>
    %cst_15 = arith.constant 1.700000e+01 : f32
    %28 = vector.broadcast %cst_15 : f32 to vector<1x1xf32>
    %29 = arith.mulf %28, %27 : vector<1x1xf32>
    %c0_16 = arith.constant 0 : index
    %c0_17 = arith.constant 0 : index
    %c0_18 = arith.constant 0 : index
    %30 = vector.load %arg2[%c0_16, %c0_17, %c0_18] : memref<2x4x256xf32, #tpu.memory_space<vmem>>, vector<1x4x256xf32>
    %31 = vector.shape_cast %30 : vector<1x4x256xf32> to vector<4x256xf32>
    %32 = vector.broadcast %13 : vector<1x1xf32> to vector<32x4xf32>
    %33 = arith.mulf %32, %0 : vector<32x4xf32>
    %34 = vector.extract_strided_slice %33 {offsets = [0, 0], sizes = [32, 1], strides = [1, 1]} : vector<32x4xf32> to vector<32x1xf32>
    %35 = vector.extract_strided_slice %31 {offsets = [0, 0], sizes = [1, 256], strides = [1, 1]} : vector<4x256xf32> to vector<1x256xf32>
    %36 = vector.broadcast %34 : vector<32x1xf32> to vector<32x256xf32>
    %37 = vector.broadcast %35 : vector<1x256xf32> to vector<32x256xf32>
    %38 = arith.mulf %36, %37 : vector<32x256xf32>
    %39 = vector.extract_strided_slice %33 {offsets = [0, 1], sizes = [32, 1], strides = [1, 1]} : vector<32x4xf32> to vector<32x1xf32>
    %40 = vector.extract_strided_slice %31 {offsets = [1, 0], sizes = [1, 256], strides = [1, 1]} : vector<4x256xf32> to vector<1x256xf32>
    %41 = vector.broadcast %39 : vector<32x1xf32> to vector<32x256xf32>
    %42 = vector.broadcast %40 : vector<1x256xf32> to vector<32x256xf32>
    %43 = arith.mulf %41, %42 : vector<32x256xf32>
    %44 = arith.addf %38, %43 : vector<32x256xf32>
    %45 = vector.extract_strided_slice %33 {offsets = [0, 2], sizes = [32, 1], strides = [1, 1]} : vector<32x4xf32> to vector<32x1xf32>
    %46 = vector.extract_strided_slice %31 {offsets = [2, 0], sizes = [1, 256], strides = [1, 1]} : vector<4x256xf32> to vector<1x256xf32>
    %47 = vector.broadcast %45 : vector<32x1xf32> to vector<32x256xf32>
    %48 = vector.broadcast %46 : vector<1x256xf32> to vector<32x256xf32>
    %49 = arith.mulf %47, %48 : vector<32x256xf32>
    %50 = arith.addf %44, %49 : vector<32x256xf32>
    %51 = vector.extract_strided_slice %33 {offsets = [0, 3], sizes = [32, 1], strides = [1, 1]} : vector<32x4xf32> to vector<32x1xf32>
    %52 = vector.extract_strided_slice %31 {offsets = [3, 0], sizes = [1, 256], strides = [1, 1]} : vector<4x256xf32> to vector<1x256xf32>
    %53 = vector.broadcast %51 : vector<32x1xf32> to vector<32x256xf32>
    %54 = vector.broadcast %52 : vector<1x256xf32> to vector<32x256xf32>
    %55 = arith.mulf %53, %54 : vector<32x256xf32>
    %56 = arith.addf %50, %55 : vector<32x256xf32>
    %57 = vector.broadcast %29 : vector<1x1xf32> to vector<32x1xf32>
    %58 = arith.mulf %57, %2 : vector<32x1xf32>
    %59 = arith.addf %1, %58 : vector<32x1xf32>
    %60 = vector.broadcast %59 : vector<32x1xf32> to vector<32x256xf32>
    %61 = arith.addf %56, %60 : vector<32x256xf32>
    %cst_19 = arith.constant 5.000000e-01 : f32
    %62 = vector.broadcast %cst_19 : f32 to vector<32x256xf32>
    %63 = arith.mulf %62, %61 : vector<32x256xf32>
    %64 = math.tanh %63 : vector<32x256xf32>
    %cst_20 = arith.constant 5.000000e-01 : f32
    %65 = vector.broadcast %cst_20 : f32 to vector<32x256xf32>
    %66 = arith.mulf %65, %64 : vector<32x256xf32>
    %cst_21 = arith.constant 5.000000e-01 : f32
    %67 = vector.broadcast %cst_21 : f32 to vector<32x256xf32>
    %68 = arith.addf %67, %66 : vector<32x256xf32>
    %69 = arith.mulf %61, %68 : vector<32x256xf32>
    %70 = vector.broadcast %15 : vector<1x1xf32> to vector<4x32xf32>
    %71 = arith.mulf %70, %3 : vector<4x32xf32>
    %cst_22 = arith.constant dense<0.000000e+00> : vector<4x256xf32>
    %72 = tpu.matmul %71, %69, %cst_22 {dimension_numbers = #tpu.dot_dimension_numbers<[1], [0], [0], [1], [0, 0, 1, 1], [], []>} : vector<4x32xf32>, vector<32x256xf32>, vector<4x256xf32> -> vector<4x256xf32>
    %73 = arith.addf %31, %72 : vector<4x256xf32>
    %74 = vector.broadcast %15 : vector<1x1xf32> to vector<4x1xf32>
    %75 = arith.mulf %74, %4 : vector<4x1xf32>
    %76 = vector.broadcast %75 : vector<4x1xf32> to vector<4x256xf32>
    %77 = arith.addf %73, %76 : vector<4x256xf32>
    %c0_23 = arith.constant 0 : index
    %c0_24 = arith.constant 0 : index
    %c0_25 = arith.constant 0 : index
    %78 = vector.load %arg8[%c0_23, %c0_24, %c0_25] : memref<2x4x256xf32, #tpu.memory_space<vmem>>, vector<1x4x256xf32>
    %79 = vector.shape_cast %78 : vector<1x4x256xf32> to vector<4x256xf32>
    %80 = vector.shape_cast %77 : vector<4x256xf32> to vector<1x4x256xf32>
    tpu.vector_store %arg8[%c0_23, %c0_24, %c0_25], %80 {strides = array<i32>} : memref<2x4x256xf32, #tpu.memory_space<vmem>>, vector<1x4x256xf32>,
    %c2_i32_26 = arith.constant 2 : i32
    %81 = arith.muli %arg0, %c2_i32_26 : i32
    %c1_i32 = arith.constant 1 : i32
    %82 = arith.addi %81, %c1_i32 : i32
    %83 = arith.index_cast %82 : i32 to index
    %84 = memref.load %arg1[%83] : memref<2xf32, #tpu.memory_space<smem>>
    %85 = vector.broadcast %84 : f32 to vector<1x1xf32>
    %86 = arith.mulf %85, %85 : vector<1x1xf32>
    %cst_27 = arith.constant 1.000000e+00 : f32
    %87 = vector.broadcast %cst_27 : f32 to vector<1x1xf32>
    %88 = arith.addf %86, %87 : vector<1x1xf32>
    %89 = math.rsqrt %88 : vector<1x1xf32>
    %cst_28 = arith.constant 0.000000e+00 : f32
    %90 = vector.broadcast %cst_28 : f32 to vector<1x1xf32>
    %91 = arith.subf %90, %85 : vector<1x1xf32>
    %cst_29 = arith.constant 1.000000e+00 : f32
    %92 = vector.broadcast %cst_29 : f32 to vector<1x1xf32>
    %93 = arith.addf %86, %92 : vector<1x1xf32>
    %94 = math.log %93 : vector<1x1xf32>
    %cst_30 = arith.constant 3.980000e+01 : f32
    %95 = vector.broadcast %cst_30 : f32 to vector<1x1xf32>
    %96 = arith.mulf %95, %94 : vector<1x1xf32>
    %cst_31 = arith.constant 0.00999999977 : f32
    %97 = vector.broadcast %cst_31 : f32 to vector<1x1xf32>
    %98 = arith.addf %97, %96 : vector<1x1xf32>
    %99 = math.sqrt %98 : vector<1x1xf32>
    %cst_32 = arith.constant 1.000000e-01 : f32
    %100 = vector.broadcast %cst_32 : f32 to vector<1x1xf32>
    %101 = arith.subf %99, %100 : vector<1x1xf32>
    %cst_33 = arith.constant 1.990000e+01 : f32
    %102 = vector.broadcast %cst_33 : f32 to vector<1x1xf32>
    %103 = arith.divf %101, %102 : vector<1x1xf32>
    %cst_34 = arith.constant 1.700000e+01 : f32
    %104 = vector.broadcast %cst_34 : f32 to vector<1x1xf32>
    %105 = arith.mulf %104, %103 : vector<1x1xf32>
    %c1 = arith.constant 1 : index
    %c0_35 = arith.constant 0 : index
    %c0_36 = arith.constant 0 : index
    %106 = vector.load %arg2[%c1, %c0_35, %c0_36] : memref<2x4x256xf32, #tpu.memory_space<vmem>>, vector<1x4x256xf32>
    %107 = vector.shape_cast %106 : vector<1x4x256xf32> to vector<4x256xf32>
    %108 = vector.broadcast %89 : vector<1x1xf32> to vector<32x4xf32>
    %109 = arith.mulf %108, %0 : vector<32x4xf32>
    %110 = vector.extract_strided_slice %109 {offsets = [0, 0], sizes = [32, 1], strides = [1, 1]} : vector<32x4xf32> to vector<32x1xf32>
    %111 = vector.extract_strided_slice %107 {offsets = [0, 0], sizes = [1, 256], strides = [1, 1]} : vector<4x256xf32> to vector<1x256xf32>
    %112 = vector.broadcast %110 : vector<32x1xf32> to vector<32x256xf32>
    %113 = vector.broadcast %111 : vector<1x256xf32> to vector<32x256xf32>
    %114 = arith.mulf %112, %113 : vector<32x256xf32>
    %115 = vector.extract_strided_slice %109 {offsets = [0, 1], sizes = [32, 1], strides = [1, 1]} : vector<32x4xf32> to vector<32x1xf32>
    %116 = vector.extract_strided_slice %107 {offsets = [1, 0], sizes = [1, 256], strides = [1, 1]} : vector<4x256xf32> to vector<1x256xf32>
    %117 = vector.broadcast %115 : vector<32x1xf32> to vector<32x256xf32>
    %118 = vector.broadcast %116 : vector<1x256xf32> to vector<32x256xf32>
    %119 = arith.mulf %117, %118 : vector<32x256xf32>
    %120 = arith.addf %114, %119 : vector<32x256xf32>
    %121 = vector.extract_strided_slice %109 {offsets = [0, 2], sizes = [32, 1], strides = [1, 1]} : vector<32x4xf32> to vector<32x1xf32>
    %122 = vector.extract_strided_slice %107 {offsets = [2, 0], sizes = [1, 256], strides = [1, 1]} : vector<4x256xf32> to vector<1x256xf32>
    %123 = vector.broadcast %121 : vector<32x1xf32> to vector<32x256xf32>
    %124 = vector.broadcast %122 : vector<1x256xf32> to vector<32x256xf32>
    %125 = arith.mulf %123, %124 : vector<32x256xf32>
    %126 = arith.addf %120, %125 : vector<32x256xf32>
    %127 = vector.extract_strided_slice %109 {offsets = [0, 3], sizes = [32, 1], strides = [1, 1]} : vector<32x4xf32> to vector<32x1xf32>
    %128 = vector.extract_strided_slice %107 {offsets = [3, 0], sizes = [1, 256], strides = [1, 1]} : vector<4x256xf32> to vector<1x256xf32>
    %129 = vector.broadcast %127 : vector<32x1xf32> to vector<32x256xf32>
    %130 = vector.broadcast %128 : vector<1x256xf32> to vector<32x256xf32>
    %131 = arith.mulf %129, %130 : vector<32x256xf32>
    %132 = arith.addf %126, %131 : vector<32x256xf32>
    %133 = vector.broadcast %105 : vector<1x1xf32> to vector<32x1xf32>
    %134 = arith.mulf %133, %2 : vector<32x1xf32>
    %135 = arith.addf %1, %134 : vector<32x1xf32>
    %136 = vector.broadcast %135 : vector<32x1xf32> to vector<32x256xf32>
    %137 = arith.addf %132, %136 : vector<32x256xf32>
    %cst_37 = arith.constant 5.000000e-01 : f32
    %138 = vector.broadcast %cst_37 : f32 to vector<32x256xf32>
    %139 = arith.mulf %138, %137 : vector<32x256xf32>
    %140 = math.tanh %139 : vector<32x256xf32>
    %cst_38 = arith.constant 5.000000e-01 : f32
    %141 = vector.broadcast %cst_38 : f32 to vector<32x256xf32>
    %142 = arith.mulf %141, %140 : vector<32x256xf32>
    %cst_39 = arith.constant 5.000000e-01 : f32
    %143 = vector.broadcast %cst_39 : f32 to vector<32x256xf32>
    %144 = arith.addf %143, %142 : vector<32x256xf32>
    %145 = arith.mulf %137, %144 : vector<32x256xf32>
    %146 = vector.broadcast %91 : vector<1x1xf32> to vector<4x32xf32>
    %147 = arith.mulf %146, %3 : vector<4x32xf32>
    %cst_40 = arith.constant dense<0.000000e+00> : vector<4x256xf32>
    %148 = tpu.matmul %147, %145, %cst_40 {dimension_numbers = #tpu.dot_dimension_numbers<[1], [0], [0], [1], [0, 0, 1, 1], [], []>} : vector<4x32xf32>, vector<32x256xf32>, vector<4x256xf32> -> vector<4x256xf32>
    %149 = arith.addf %107, %148 : vector<4x256xf32>
    %150 = vector.broadcast %91 : vector<1x1xf32> to vector<4x1xf32>
    %151 = arith.mulf %150, %4 : vector<4x1xf32>
    %152 = vector.broadcast %151 : vector<4x1xf32> to vector<4x256xf32>
    %153 = arith.addf %149, %152 : vector<4x256xf32>
    %c1_41 = arith.constant 1 : index
    %c0_42 = arith.constant 0 : index
    %c0_43 = arith.constant 0 : index
    %154 = vector.load %arg8[%c1_41, %c0_42, %c0_43] : memref<2x4x256xf32, #tpu.memory_space<vmem>>, vector<1x4x256xf32>
    %155 = vector.shape_cast %154 : vector<1x4x256xf32> to vector<4x256xf32>
    %156 = vector.shape_cast %153 : vector<4x256xf32> to vector<1x4x256xf32>
    tpu.vector_store %arg8[%c1_41, %c0_42, %c0_43], %156 {strides = array<i32>} : memref<2x4x256xf32, #tpu.memory_space<vmem>>, vector<1x4x256xf32>,
    return
  }
  func.func @transform_0(%arg0: i32) -> i32 {
    %c0_i32 = arith.constant 0 : i32
    %c0_i32_0 = arith.constant 0 : i32
    return %c0_i32 : i32
  }
  func.func @transform_1(%arg0: i32) -> (i32, i32, i32) {
    %c0_i32 = arith.constant 0 : i32
    %c0_i32_0 = arith.constant 0 : i32
    %c0_i32_1 = arith.constant 0 : i32
    return %arg0, %c0_i32, %c0_i32_0 : i32, i32, i32
  }
  func.func @transform_2(%arg0: i32) -> (i32, i32) {
    %c0_i32 = arith.constant 0 : i32
    %c0_i32_0 = arith.constant 0 : i32
    %c0_i32_1 = arith.constant 0 : i32
    return %c0_i32, %c0_i32_0 : i32, i32
  }
  func.func @transform_3(%arg0: i32) -> (i32, i32) {
    %c0_i32 = arith.constant 0 : i32
    %c0_i32_0 = arith.constant 0 : i32
    %c0_i32_1 = arith.constant 0 : i32
    return %c0_i32, %c0_i32_0 : i32, i32
  }
  func.func @transform_4(%arg0: i32) -> (i32, i32) {
    %c0_i32 = arith.constant 0 : i32
    %c0_i32_0 = arith.constant 0 : i32
    %c0_i32_1 = arith.constant 0 : i32
    return %c0_i32, %c0_i32_0 : i32, i32
  }
  func.func @transform_5(%arg0: i32) -> (i32, i32) {
    %c0_i32 = arith.constant 0 : i32
    %c0_i32_0 = arith.constant 0 : i32
    %c0_i32_1 = arith.constant 0 : i32
    return %c0_i32, %c0_i32_0 : i32, i32
  }
  func.func @transform_6(%arg0: i32) -> (i32, i32) {
    %c0_i32 = arith.constant 0 : i32
    %c0_i32_0 = arith.constant 0 : i32
    %c0_i32_1 = arith.constant 0 : i32
    return %c0_i32, %c0_i32_0 : i32, i32
  }
  func.func @transform_7(%arg0: i32) -> (i32, i32, i32) {
    %c0_i32 = arith.constant 0 : i32
    %c0_i32_0 = arith.constant 0 : i32
    %c0_i32_1 = arith.constant 0 : i32
    return %arg0, %c0_i32, %c0_i32_0 : i32, i32, i32
  }
}

</mosaic_0001>

<bundles_post_ra>
// kernel: tpu_custom_call.1
= control target key start
LH: loop header
LB: loop body
LE: loop exit
PB: predicated region body
PF: predicated region fallthrough
CT: control target
= control target key end

     0   :  { %12 = vsyncpa [#allocation4], 0  ;;  %s1476_s0 = inlined_call_operand.vmem [shape: f32[2], index: 0, kind: input, shape index: {}]   ;;  %s1477_s1 = inlined_call_operand.vmem [shape: f32[2,4,256], index: 1, kind: input, shape index: {}]   ;;  %s1478_s2 = inlined_call_operand.vmem [shape: f32[32,4], index: 2, kind: input, shape index: {}]   ;;  %s1479_s3 = inlined_call_operand.vmem [shape: f32[32,1], index: 3, kind: input, shape index: {}]   ;;  %s1480_s4 = inlined_call_operand.vmem [shape: f32[32,1], index: 4, kind: input, shape index: {}]   ;;  %s1481_s5 = inlined_call_operand.vmem [shape: f32[4,32], index: 5, kind: input, shape index: {}]   ;;  %s1482_s6 = inlined_call_operand.vmem [shape: f32[4,1], index: 6, kind: input, shape index: {}]   ;;  %s1483_s7 = inlined_call_operand.hbm [shape: f32[2,4,256], index: 7, kind: output, shape index: {}]  }
   0x1   :  { %13 = vsyncpa [#allocation3], 0  ;;  %s20_s26 = sshll.u32 %s1476_s0, 4  ;;  %s21_s26 = int_to_ptr.vmem [resolvable:$true] %s20_s26 }
   0x2   :  { %s958_s27 = scalar_lea.vmem %s21_s26, 16  ;;  %p963_p1 = scmp.lt.s32.totalorder %s21_s26, %s21_s26 }
   0x3   :  { %p959_p0 = scmp.ne.s32.totalorder %s21_s26, %s958_s27  ;;  %p964_p2 = scmp.lt.s32.totalorder %s958_s27, %s958_s27 }
   0x5   :  { %p965_p3 = por %p964_p2, %p963_p1 }
   0x7   :  { %p966_p4 = pnand %p965_p3, %p959_p0 }
   0x9   :  { %969 = shalt.err (!%p966_p4)
}
   0xa   :  { %s996_s28 = smov [#allocation2]  }
   0xb   :  { %23 = dma.vmem_to_smem %s21_s26, 16, %s996_s28, [#allocation4]  }
   0xc   :  { %992 = dma.done.wait [#allocation4], 16  }
   0xd   :  { %993 = vsyncadd [#allocation4], 4294967280 }
   0xe   :  { %39 = sfence }
   0xf   :  { %s865_s29 = sld [smem:[#allocation2 + $0x1]]  ;;  %s55_s30 = sld [smem:[#allocation2]]  ;;  %v997_v0 = vmov 1   ;;  %v40_v7 = vld [vmem:[%s1478_s2] sm:$0xff]  ;;  %v43_v9 = vld [vmem:[%s1478_s2 + $0x18] sm:$0xff]  ;;  %v41_v12 = vld [vmem:[%s1478_s2 + $0x8] sm:$0xff] }
  0x10   :  { %897 = vset.pattern.permute.xlu0 %v997_v0  ;;  %895 = vset.pattern.permute.xlu1 %v997_v0  ;;  %v998_v25 = vmov 0   ;;  %v42_v26 = vld [vmem:[%s1478_s2 + $0x10] sm:$0xff]  ;;  %v999_v27 = vmov 2   ;;  %v1000_v31 = vmov 3   ;;  %v48_v47 = vld [vmem:[%s1480_s4] sm:$0xff]  ;;  %v51_v51 = vld [vmem:[%s1480_s4 + $0x18] sm:$0xff] }
  0x11   :  { %v44_v50 = vld [vmem:[%s1479_s3] sm:$0xff]  ;;  %v47_v54 = vld [vmem:[%s1479_s3 + $0x18] sm:$0xff]  ;;  %v49_v62 = vld [vmem:[%s1480_s4 + $0x8] sm:$0xff]  ;;  %vm355_vm4 = vcmask 261120  }
  0x12   :  { %v53_v59 = vld [vmem:[%s1482_s6] sm:$0xf] }
  0x15   :  { %v1051_v1 = vstv %s865_s29  ;;  %v1053_v2 = vstv %s55_s30 }
  0x16   :  { %1496 = vst [vmem:[#allocation8_spill] sm:$0xff] %v1051_v1  ;;  %1497 = vst [vmem:[#allocation9_spill] sm:$0xff] %v1053_v2  ;;  %v453_v3 = vmul.f32 %v1051_v1, %v1051_v1  ;;  %v57_v4 = vmul.f32 %v1053_v2, %v1053_v2  ;;  %v1484_v58 = vsub.f32 0.0, %v1051_v1 }
  0x18   :  { %v454_v5 = vadd.f32 1.0, %v453_v3  ;;  %v58_v6 = vadd.f32 1.0, %v57_v4  ;;  %v830_v60 = vmul.f32 %v1484_v58, %v53_v59  ;;  %v45_v3 = vld [vmem:[%s1479_s3 + $0x8] sm:$0xff] }
  0x1a   :  { %914 = vrsqrt.f32 %v454_v5 }
  0x1b   :  { %916 = vrsqrt.f32 %v58_v6 }
  0x1c   :  { %918 = vlog2.f32 %v454_v5 }
  0x1d   :  { %920 = vlog2.f32 %v58_v6  ;;  %v50_v6 = vld [vmem:[%s1480_s4 + $0x10] sm:$0xff] }
  0x24   :  { %v915_v8 = vpop.eup %914 }
  0x25   :  { %v917_v10 = vpop.eup %916  ;;  %v1065_v11 = vmul.f32 %v915_v8, %v40_v7  ;;  %v1079_v19 = vmul.f32 %v915_v8, %v43_v9  ;;  %v1082_v22 = vmul.f32 %v915_v8, %v41_v12  ;;  %v475_v34 = vmul.f32 %v915_v8, %v42_v26 }
  0x26   :  { %v919_v13 = vpop.eup %918  ;;  %v1070_v14 = vmul.f32 %v917_v10, %v40_v7  ;;  %v1073_v15 = vmul.f32 %v917_v10, %v43_v9  ;;  %v1076_v18 = vmul.f32 %v917_v10, %v41_v12  ;;  %v1092_v29 = vmul.f32 %v917_v10, %v42_v26  ;;  %v46_v9 = vld [vmem:[%s1479_s3 + $0x10] sm:$0xff] }
  0x27   :  { %525 = vperm.xlu0 %897, %v1065_v11   ;;  %v458_v16 = vmul.f32 0.6931472, %v919_v13  ;;  %v921_v17 = vpop.eup %920  ;;  %v1485_v13 = vsub.f32 0.0, %v1053_v2 }
  0x28   :  { %129 = vperm.xlu1 %895, %v1070_v14   ;;  %v62_v21 = vmul.f32 0.6931472, %v921_v17 }
  0x29   :  { %v459_v20 = vmul.f32 39.8, %v458_v16 }
  0x2a   :  { %v63_v24 = vmul.f32 39.8, %v62_v21  ;;  %v1174_v21 = vld [vmem:[%s1477_s1 + $0x8] sm:$0xff] }
  0x2b   :  { %141 = vperm.xlu0 %897, %v1073_v15   ;;  %v460_v23 = vadd.f32 0.01, %v459_v20  ;;  %1499 = vst [vmem:[#allocation11_spill] sm:$0xff] %v1174_v21 }
  0x2c   :  { %133 = vperm.xlu1 %895, %v1076_v18   ;;  %v64_v28 = vadd.f32 0.01, %v63_v24 }
  0x2d   :  { %922 = vrsqrt.f32 %v460_v23  ;;  %vm463_vm0 = vcmp.eq.f32.partialorder %v460_v23, inf  ;;  %v466_v35 = vand.u32 2147483648, %v460_v23  ;;  %vm465_vm1 = vcmp.eq.f32.partialorder %v460_v23, 0.0 }
  0x2e   :  { %924 = vrsqrt.f32 %v64_v28  ;;  %vm67_vm2 = vcmp.eq.f32.partialorder %v64_v28, inf  ;;  %v70_v39 = vand.u32 2147483648, %v64_v28  ;;  %vm69_vm3 = vcmp.eq.f32.partialorder %v64_v28, 0.0 }
  0x2f   :  { %537 = vperm.xlu0 %897, %v1079_v19  }
  0x30   :  { %896 = vset.pattern.permute.xlu1 %v998_v25 }
  0x31   :  { %484 = vperm.xlu1 %896, %v1082_v22  }
  0x33   :  { %905 = vset.pattern.permute.xlu0 %v999_v27 }
  0x34   :  { %183 = vperm.xlu0 %905, %v1076_v18  }
  0x35   :  { %898 = vset.pattern.permute.xlu1 %v997_v0 }
  0x36   :  { %529 = vperm.xlu1 %898, %v1082_v22  }
  0x37   :  { %v923_v30 = vpop.eup %922 }
  0x38   :  { %187 = vperm.xlu0 %905, %v1092_v29   ;;  %v462_v32 = vmul.f32 %v923_v30, %v460_v23  ;;  %v925_v33 = vpop.eup %924 }
  0x39   :  { %v66_v37 = vmul.f32 %v925_v33, %v64_v28 }
  0x3a   :  { %899 = vset.pattern.permute.xlu1 %v999_v27  ;;  %v464_v36 = vsel %vm463_vm0, %v460_v23, %v462_v32 }
  0x3b   :  { %179 = vperm.xlu1 %899, %v1070_v14   ;;  %v467_v38 = vsel %vm465_vm1, %v466_v35, %v464_v36  ;;  %v68_v40 = vsel %vm67_vm2, %v64_v28, %v66_v37 }
  0x3c   :  { %587 = vperm.xlu0 %905, %v1079_v19   ;;  %v866_v41 = vadd.f32 -0.1, %v467_v38  ;;  %v71_v42 = vsel %vm69_vm3, %v70_v39, %v68_v40 }
  0x3d   :  { %v863_v44 = vadd.f32 -0.1, %v71_v42 }
  0x3e   :  { %v469_v43 = vmul.f32 0.050251257, %v866_v41 }
  0x3f   :  { %575 = vperm.xlu1 %899, %v1065_v11   ;;  %v74_v46 = vmul.f32 0.050251257, %v863_v44 }
  0x40   :  { %909 = vset.pattern.permute.xlu0 %v1000_v31  ;;  %v470_v45 = vmul.f32 17.0, %v469_v43 }
  0x41   :  { %241 = vperm.xlu0 %909, %v1073_v15   ;;  %v75_v49 = vmul.f32 17.0, %v74_v46 }
  0x42   :  { %v674_v48 = vmul.f32 %v470_v45, %v48_v47  ;;  %v677_v56 = vmul.f32 %v470_v45, %v51_v51  ;;  %v675_v5 = vmul.f32 %v470_v45, %v49_v62 }
  0x43   :  { %579 = vperm.xlu1 %899, %v1082_v22   ;;  %v281_v53 = vmul.f32 %v75_v49, %v51_v51  ;;  %v278_v61 = vmul.f32 %v75_v49, %v48_v47  ;;  %v280_v8 = vmul.f32 %v75_v49, %v50_v6 }
  0x44   :  { %v678_v52 = vadd.f32 %v674_v48, %v44_v50  ;;  %v681_v57 = vadd.f32 %v677_v56, %v47_v54  ;;  %v679_v7 = vadd.f32 %v675_v5, %v45_v3 }
  0x45   :  { %633 = vperm.xlu0 %909, %v475_v34   ;;  %v285_v55 = vadd.f32 %v281_v53, %v47_v54  ;;  %v282_v63 = vadd.f32 %v278_v61, %v44_v50  ;;  %v284_v10 = vadd.f32 %v280_v8, %v46_v9 }
  0x47   :  { %900 = vset.pattern.permute.xlu1 %v998_v25 }
  0x48   :  { %98 = vperm.xlu1 %900, %v1073_v15  }
  0x49   :  { %911 = vset.pattern.permute.xlu0 %v998_v25 }
  0x4a   :  { %83 = vperm.xlu0 %911, %v1070_v14  }
  0x4c   :  { %901 = vset.pattern.permute.xlu1 %v997_v0 }
  0x4d   :  { %137 = vperm.xlu1 %901, %v1092_v29  }
  0x4e   :  { %88 = vperm.xlu0 %911, %v1076_v18  }
  0x51   :  { %902 = vset.pattern.permute.xlu1 %v1000_v31 }
  0x52   :  { %229 = vperm.xlu1 %902, %v1070_v14   ;;  %479 = vperm.xlu0 %911, %v1065_v11   ;;  %v435_v14 = vmul.f32 %v1485_v13, %v53_v59  ;;  %v1230_v59 = vld [vmem:[%s1477_s1] sm:$0xff] }
  0x53   :  { %1501 = vst [vmem:[#allocation13_spill] sm:$0xff] %v1230_v59 }
  0x56   :  { %233 = vperm.xlu1 %902, %v1076_v18   ;;  %93 = vperm.xlu0 %911, %v1092_v29   ;;  %v1001_v18 = vmov 0.0  }
  0x57   :  { %423 = vmatprep.mubr.f32.mxu0 %v1001_v18  ;;  %818 = vmatprep.mubr.f32.mxu1 %v1001_v18 }
  0x5a   :  { %903 = vset.pattern.permute.xlu1 %v998_v25  ;;  %489 = vperm.xlu0 %911, %v475_v34  }
  0x5b   :  { %494 = vperm.xlu1 %903, %v1079_v19  }
  0x5e   :  { %684 = vperm.xlu0 %911, %v678_v52  }
  0x5f   :  { %904 = vset.pattern.permute.xlu1 %v997_v0  ;;  %v279_v0 = vmul.f32 %v75_v49, %v49_v62 }
  0x60   :  { %533 = vperm.xlu1 %904, %v475_v34  }
  0x61   :  { %v283_v4 = vadd.f32 %v279_v0, %v45_v3 }
  0x62   :  { %303 = vperm.xlu0 %911, %v285_v55  }
  0x64   :  { %906 = vset.pattern.permute.xlu1 %v1000_v31 }
  0x65   :  { %625 = vperm.xlu1 %906, %v1065_v11   ;;  %v676_v11 = vmul.f32 %v470_v45, %v50_v6 }
  0x66   :  { %699 = vperm.xlu0 %911, %v681_v57  }
  0x67   :  { %v680_v12 = vadd.f32 %v676_v11, %v46_v9 }
  0x69   :  { %629 = vperm.xlu1 %906, %v1082_v22  }
  0x6a   :  { %833 = vperm.xlu0 %911, %v830_v60  }
  0x6d   :  { %907 = vset.pattern.permute.xlu1 %v999_v27 }
  0x6e   :  { %191 = vperm.xlu1 %907, %v1073_v15   ;;  %v102_v15 = vlaneseq }
  0x70   :  { %v1165_v17 = vshrl.u32 %v102_v15, 7 }
  0x72   :  { %583 = vperm.xlu1 %907, %v475_v34   ;;  %1498 = vst [vmem:[#allocation10_spill] sm:$0xff] %v1165_v17  ;;  %v108_v20 = vsub.s32 4, %v1165_v17  ;;  %v146_v23 = vsub.s32 1, %v1165_v17  ;;  %v150_v24 = vsub.s32 5, %v1165_v17  ;;  %v196_v60 = vsub.s32 2, %v1165_v17 }
  0x73   :  { %v200_v61 = vsub.s32 6, %v1165_v17  ;;  %v246_v62 = vsub.s32 3, %v1165_v17 }
  0x74   :  { %v547_v26 = vrot.slane %v1174_v21, %v150_v24  ;;  %v505_v28 = vrot.slane %v1174_v21, %v108_v20  ;;  %v147_v3 = vrot.slane %v1230_v59, %v146_v23  ;;  %v197_v5 = vrot.slane %v1230_v59, %v196_v60 }
  0x75   :  { %v201_v6 = vrot.slane %v1230_v59, %v200_v61  ;;  %v593_v8 = vrot.slane %v1174_v21, %v196_v60  ;;  %v597_v9 = vrot.slane %v1174_v21, %v200_v61  ;;  %v109_v18 = vrot.slane %v1230_v59, %v108_v20 }
  0x76   :  { %908 = vset.pattern.permute.xlu1 %v1000_v31 }
  0x77   :  { %237 = vperm.xlu1 %908, %v1092_v29  }
  0x7b   :  { %910 = vset.pattern.permute.xlu1 %v998_v25 }
  0x7c   :  { %288 = vperm.xlu1 %910, %v282_v63   ;;  %v250_v63 = vsub.s32 7, %v1165_v17 }
  0x7e   :  { %v251_v11 = vrot.slane %v1230_v59, %v250_v63 }
  0x80   :  { %293 = vperm.xlu1 %910, %v283_v4   ;;  %v151_v4 = vrot.slane %v1230_v59, %v150_v24  ;;  %v157_v24 = vrot.slane %v147_v3, %v146_v23 }
  0x84   :  { %912 = vset.pattern.permute.xlu1 %v1000_v31  ;;  %v1187_v31 = vrot.slane %v547_v26, %v146_v23  ;;  %v1251_v26 = vrot.slane %v197_v5, %v196_v60 }
  0x85   :  { %637 = vperm.xlu1 %912, %v1079_v19   ;;  %v1168_v19 = vsub.s32 0, %v1165_v17 }
  0x86   :  { %1500 = vst [vmem:[#allocation12_spill] sm:$0xff] %v1187_v31 }
  0x87   :  { %v501_v27 = vrot.slane %v1174_v21, %v1168_v19  ;;  %v1193_v34 = vrot.slane %v505_v28, %v1168_v19  ;;  %v105_v15 = vrot.slane %v1230_v59, %v1168_v19  ;;  %v119_v61 = vrot.slane %v109_v18, %v1168_v19 }
  0x89   :  { %913 = vset.pattern.permute.xlu1 %v998_v25  ;;  %v543_v25 = vrot.slane %v1174_v21, %v146_v23  ;;  %v1190_v33 = vrot.slane %v501_v27, %v1168_v19  ;;  %v1253_v27 = vrot.slane %v201_v6, %v196_v60 }
  0x8a   :  { %689 = vperm.xlu1 %913, %v679_v7  }
  0x8b   :  { %v1185_v30 = vrot.slane %v543_v25, %v146_v23  ;;  %v161_v25 = vrot.slane %v151_v4, %v146_v23  ;;  %v115_v23 = vrot.slane %v105_v15, %v1168_v19 }
  0x8e   :  { %298 = vperm.xlu1 %913, %v284_v10   ;;  %v247_v10 = vrot.slane %v1230_v59, %v246_v62 }
  0x92   :  { %694 = vperm.xlu1 %913, %v680_v12   ;;  %v643_v12 = vrot.slane %v1174_v21, %v246_v62 }
  0x96   :  { %438 = vperm.xlu1 %913, %v435_v14   ;;  %v647_v14 = vrot.slane %v1174_v21, %v250_v63 }
  0x98   :  { %v1267_v20 = vrot.slane %v647_v14, %v246_v62 }
  0xa6   :  { %v526_v32 = vpop.permute.xlu0 %525 }
  0xa7   :  { %v1163_v16 = vpop.permute.xlu1 %129  ;;  %v558_v4 = vmul.f32 %v1185_v30, %v526_v32 }
  0xa8   :  { %v162_v63 = vmul.f32 %v157_v24, %v1163_v16  ;;  %v163_v3 = vmul.f32 %v161_v25, %v1163_v16 }
  0xaa   :  { %v142_v40 = vpop.permute.xlu0 %141 }
  0xab   :  { %v1176_v22 = vpop.permute.xlu1 %133 }
  0xac   :  { %v164_v5 = vmul.f32 %v157_v24, %v1176_v22  ;;  %v165_v6 = vmul.f32 %v161_v25, %v1176_v22 }
  0xae   :  { %v538_v44 = vpop.permute.xlu0 %537 }
  0xb0   :  { %v485_v29 = vpop.permute.xlu1 %484 }
  0xb1   :  { %v518_v36 = vmul.f32 %v1190_v33, %v485_v29  ;;  %v519_v37 = vmul.f32 %v1193_v34, %v485_v29 }
  0xb3   :  { %v184_v47 = vpop.permute.xlu0 %183 }
  0xb4   :  { %v214_v19 = vmul.f32 %v1251_v26, %v184_v47  ;;  %v215_v16 = vmul.f32 %v1253_v27, %v184_v47 }
  0xb5   :  { %v530_v35 = vpop.permute.xlu1 %529 }
  0xb6   :  { %v560_v38 = vmul.f32 %v1185_v30, %v530_v35  ;;  %v561_v39 = vmul.f32 %v1187_v31, %v530_v35  ;;  %v1257_v35 = vrot.slane %v593_v8, %v196_v60  ;;  %v168_v8 = vmul.f32 %v157_v24, %v142_v40 }
  0xb7   :  { %v188_v49 = vpop.permute.xlu0 %187 }
  0xb8   :  { %v1199_v41 = vadd.f32 %v560_v38, %v518_v36  ;;  %v1201_v42 = vadd.f32 %v561_v39, %v519_v37  ;;  %1503 = vst [vmem:[#allocation15_spill] sm:$0xff] %v1257_v35  ;;  %v1259_v36 = vrot.slane %v597_v9, %v196_v60  ;;  %v1261_v37 = vrot.slane %v247_v10, %v246_v62 }
  0xb9   :  { %v1263_v38 = vrot.slane %v251_v11, %v246_v62  ;;  %v1265_v39 = vrot.slane %v643_v12, %v246_v62  ;;  %v559_v60 = vmul.f32 %v1187_v31, %v526_v32  ;;  %v169_v9 = vmul.f32 %v161_v25, %v142_v40 }
  0xba   :  { %v1203_v43 = vpop.permute.xlu1 %179  ;;  %1504 = vst [vmem:[#allocation16_spill] sm:$0xff] %v1259_v36  ;;  %v1278_v62 = vmul.f32 %v1185_v30, %v538_v44  ;;  %v1281_v10 = vmul.f32 %v1187_v31, %v538_v44  ;;  %v1286_v12 = vmul.f32 %v1251_v26, %v188_v49  ;;  %v1289_v32 = vmul.f32 %v1253_v27, %v188_v49 }
  0xbb   :  { %v1213_v51 = vpop.permute.xlu0 %587  ;;  %v212_v22 = vmul.f32 %v1251_v26, %v1203_v43  ;;  %v213_v40 = vmul.f32 %v1253_v27, %v1203_v43 }
  0xbc   :  { %v1301_v58 = vmul.f32 %v1257_v35, %v1213_v51  ;;  %v1305_v49 = vmul.f32 %v1259_v36, %v1213_v51 }
  0xbe   :  { %v1205_v45 = vpop.permute.xlu1 %575  ;;  %1505 = vst [vmem:[#allocation17_spill] sm:$0xff] %v1301_v58  ;;  %1506 = vst [vmem:[#allocation18_spill] sm:$0xff] %v1305_v49 }
  0xbf   :  { %v608_v43 = vmul.f32 %v1257_v35, %v1205_v45  ;;  %v609_v59 = vmul.f32 %v1259_v36, %v1205_v45 }
  0xc0   :  { %v1219_v54 = vpop.permute.xlu0 %241 }
  0xc1   :  { %v268_v1 = vmul.f32 %v1261_v37, %v1219_v54  ;;  %v1319_v51 = vmul.f32 %v1263_v38, %v1219_v54 }
  0xc2   :  { %v1207_v46 = vpop.permute.xlu1 %579 }
  0xc3   :  { %v610_v44 = vmul.f32 %v1257_v35, %v1207_v46  ;;  %v611_v47 = vmul.f32 %v1259_v36, %v1207_v46 }
  0xc4   :  { %v1223_v56 = vpop.permute.xlu0 %633 }
  0xc5   :  { %v1324_v35 = vadd.f32 %v610_v44, %v1199_v41  ;;  %v1327_v45 = vadd.f32 %v611_v47, %v1201_v42  ;;  %v1335_v54 = vmul.f32 %v1267_v20, %v1223_v56 }
  0xc7   :  { %v1209_v48 = vpop.permute.xlu1 %98 }
  0xc8   :  { %v126_v46 = vmul.f32 %v115_v23, %v1209_v48 }
  0xc9   :  { %v84_v0 = vpop.permute.xlu0 %83 }
  0xca   :  { %v120_v15 = vmul.f32 %v115_v23, %v84_v0  ;;  %v121_v18 = vmul.f32 %v119_v61, %v84_v0  ;;  %v127_v0 = vmul.f32 %v119_v61, %v1209_v48 }
  0xcc   :  { %v1211_v50 = vpop.permute.xlu1 %137  ;;  %v170_v48 = vadd.f32 %v162_v63, %v120_v15  ;;  %v171_v36 = vadd.f32 %v163_v3, %v121_v18  ;;  %v177_v31 = vadd.f32 %v169_v9, %v127_v0 }
  0xcd   :  { %v89_v28 = vpop.permute.xlu0 %88  ;;  %v166_v41 = vmul.f32 %v157_v24, %v1211_v50  ;;  %v167_v63 = vmul.f32 %v161_v25, %v1211_v50 }
  0xce   :  { %v122_v13 = vmul.f32 %v115_v23, %v89_v28  ;;  %v123_v21 = vmul.f32 %v119_v61, %v89_v28 }
  0xd0   :  { %v172_v49 = vadd.f32 %v164_v5, %v122_v13  ;;  %v173_v58 = vadd.f32 %v165_v6, %v123_v21  ;;  %v220_v21 = vadd.f32 %v212_v22, %v170_v48  ;;  %v221_v5 = vadd.f32 %v213_v40, %v171_v36 }
  0xd1   :  { %v1215_v52 = vpop.permute.xlu1 %229  ;;  %v480_v14 = vpop.permute.xlu0 %479 }
  0xd2   :  { %v516_v28 = vmul.f32 %v1190_v33, %v480_v14  ;;  %v517_v2 = vmul.f32 %v1193_v34, %v480_v14  ;;  %v176_v14 = vadd.f32 %v168_v8, %v126_v46  ;;  %v262_v42 = vmul.f32 %v1261_v37, %v1215_v52 }
  0xd3   :  { %v263_v3 = vmul.f32 %v1263_v38, %v1215_v52  ;;  %v222_v9 = vadd.f32 %v214_v19, %v172_v49  ;;  %v223_v18 = vadd.f32 %v215_v16, %v173_v58 }
  0xd4   :  { %v566_v44 = vadd.f32 %v558_v4, %v516_v28  ;;  %v567_v47 = vadd.f32 %v559_v60, %v517_v2  ;;  %v270_v25 = vadd.f32 %v262_v42, %v220_v21 }
  0xd5   :  { %v1217_v53 = vpop.permute.xlu1 %233 }
  0xd6   :  { %v264_v50 = vmul.f32 %v1261_v37, %v1217_v53  ;;  %v265_v2 = vmul.f32 %v1263_v38, %v1217_v53  ;;  %v616_v36 = vadd.f32 %v608_v43, %v566_v44 }
  0xd8   :  { %v272_v40 = vadd.f32 %v264_v50, %v222_v9  ;;  %v273_v49 = vadd.f32 %v265_v2, %v223_v18  ;;  %v1513_v9 = vld [vmem:[#allocation15_spill] sm:$0xff] }
  0xda   :  { %v1221_v55 = vpop.permute.xlu1 %494 }
  0xdb   :  { %v522_v4 = vmul.f32 %v1190_v33, %v1221_v55  ;;  %v523_v58 = vmul.f32 %v1193_v34, %v1221_v55 }
  0xdd   :  { %v572_v28 = vadd.f32 %v1278_v62, %v522_v4  ;;  %v573_v48 = vadd.f32 %v1281_v10, %v523_v58 }
  0xdf   :  { %v1225_v57 = vpop.permute.xlu1 %533 }
  0xe4   :  { %v1240_v7 = vpop.permute.xlu1 %625 }
  0xe5   :  { %v658_v24 = vmul.f32 %v1265_v39, %v1240_v7 }
  0xe7   :  { %v666_v22 = vadd.f32 %v658_v24, %v616_v36 }
  0xe8   :  { %v1255_v29 = vpop.permute.xlu1 %629 }
  0xe9   :  { %1502 = vst [vmem:[#allocation14_spill] sm:$0xff] %v1255_v29  ;;  %v94_v29 = vpop.permute.xlu0 %93 }
  0xea   :  { %v125_v6 = vmul.f32 %v119_v61, %v94_v29 }
  0xec   :  { %v175_v16 = vadd.f32 %v167_v63, %v125_v6  ;;  %v1511_v6 = vld [vmem:[#allocation18_spill] sm:$0xff] }
  0xed   :  { %v192_v11 = vpop.permute.xlu1 %191  ;;  %v490_v8 = vpop.permute.xlu0 %489 }
  0xee   :  { %v218_v13 = vmul.f32 %v1251_v26, %v192_v11  ;;  %v219_v52 = vmul.f32 %v1253_v27, %v192_v11  ;;  %v659_v26 = vmul.f32 %v1267_v20, %v1240_v7  ;;  %v520_v7 = vmul.f32 %v1190_v33, %v490_v8 }
  0xef   :  { %v521_v43 = vmul.f32 %v1193_v34, %v490_v8  ;;  %v562_v34 = vmul.f32 %v1185_v30, %v1225_v57  ;;  %v225_v62 = vadd.f32 %v1289_v32, %v175_v16  ;;  %v1510_v30 = vld [vmem:[#allocation17_spill] sm:$0xff]  ;;  %v623_v8 = vadd.f32 %v1511_v6, %v573_v48 }
  0xf0   :  { %v226_v60 = vadd.f32 %v218_v13, %v176_v14  ;;  %v1509_v13 = vld [vmem:[#allocation14_spill] sm:$0xff] }
  0xf1   :  { %v1313_v17 = vpop.permute.xlu1 %583  ;;  %v685_v53 = vpop.permute.xlu0 %684  ;;  %v660_v21 = vmul.f32 %v1265_v39, %v1509_v13 }
  0xf2   :  { %1507 = vst [vmem:[#allocation19_spill] sm:$0xff] %v1313_v17  ;;  %v1331_v17 = vmul.f32 %v1265_v39, %v1223_v56  ;;  %v124_v56 = vmul.f32 %v115_v23, %v94_v29  ;;  %v617_v29 = vadd.f32 %v609_v59, %v567_v47  ;;  %v271_v23 = vadd.f32 %v263_v3, %v221_v5 }
  0xf3   :  { %v227_v59 = vadd.f32 %v219_v52, %v177_v31  ;;  %v276_v14 = vadd.f32 %v268_v1, %v226_v60  ;;  %v1370_v63 = vadd.f32 %v685_v53, %v666_v22  ;;  %v1508_v1 = vld [vmem:[#allocation12_spill] sm:$0xff] }
  0xf4   :  { %v174_v61 = vadd.f32 %v166_v41, %v124_v56  ;;  %v667_v46 = vadd.f32 %v659_v26, %v617_v29  ;;  %v563_v10 = vmul.f32 %v1508_v1, %v1225_v57  ;;  %v661_v57 = vmul.f32 %v1267_v20, %v1509_v13 }
  0xf5   :  { %v277_v3 = vadd.f32 %v1319_v51, %v227_v59  ;;  %v622_v51 = vadd.f32 %v1510_v30, %v572_v28  ;;  %v710_v32 = vmul.f32 0.5, %v1370_v63  ;;  %v570_v26 = vadd.f32 %v562_v34, %v520_v7 }
  0xf6   :  { %v1343_v15 = vpop.permute.xlu1 %237  ;;  %v224_v42 = vadd.f32 %v1286_v12, %v174_v61  ;;  %v1382_v44 = vadd.f32 %v685_v53, %v667_v46  ;;  %v304_v12 = vpop.permute.xlu0 %303  ;;  %v571_v36 = vadd.f32 %v563_v10, %v521_v43  ;;  %v669_v53 = vadd.f32 %v661_v57, %v1327_v45 }
  0xf7   :  { %v1388_v5 = vadd.f32 %v304_v12, %v276_v14  ;;  %v1397_v2 = vadd.f32 %v304_v12, %v277_v3  ;;  %v266_v58 = vmul.f32 %v1261_v37, %v1343_v15 }
  0xf8   :  { %v711_v29 = vmul.f32 0.5, %v1382_v44 }
  0xf9   :  { %v1512_v24 = vld [vmem:[#allocation19_spill] sm:$0xff]  ;;  %v320_v4 = vmul.f32 0.5, %v1388_v5  ;;  %v321_v22 = vmul.f32 0.5, %v1397_v2  ;;  %v274_v45 = vadd.f32 %v266_v58, %v224_v42 }
  0xfa   :  { %v612_v18 = vmul.f32 %v1513_v9, %v1512_v24  ;;  %v700_v16 = vpop.permute.xlu0 %699 }
  0xfb   :  { %v289_v19 = vpop.permute.xlu1 %288 }
  0xfc   :  { %v1359_v27 = vadd.f32 %v289_v19, %v270_v25  ;;  %v1361_v11 = vadd.f32 %v289_v19, %v271_v23  ;;  %v1514_v23 = vld [vmem:[#allocation16_spill] sm:$0xff]  ;;  %v620_v7 = vadd.f32 %v612_v18, %v570_v26 }
  0xfd   :  { %v613_v61 = vmul.f32 %v1514_v23, %v1512_v24 }
  0xfe   :  { %v314_v0 = vmul.f32 0.5, %v1359_v27  ;;  %v315_v55 = vmul.f32 0.5, %v1361_v11  ;;  %v670_v3 = vadd.f32 %v1331_v17, %v620_v7 }
  0xff   :  { %v294_v41 = vpop.permute.xlu1 %293  ;;  %v621_v43 = vadd.f32 %v613_v61, %v571_v36 }
 0x100   :  { %926 = vtanh.f32 %v314_v0  ;;  %v1372_v31 = vadd.f32 %v294_v41, %v272_v40  ;;  %v1374_v33 = vadd.f32 %v294_v41, %v273_v49 }
 0x101   :  { %928 = vtanh.f32 %v315_v55  ;;  %v671_v42 = vadd.f32 %v1335_v54, %v621_v43 }
 0x102   :  { %v316_v47 = vmul.f32 0.5, %v1372_v31  ;;  %v317_v56 = vmul.f32 0.5, %v1374_v33 }
 0x104   :  { %930 = vtanh.f32 %v316_v47  ;;  %v638_v50 = vpop.permute.xlu1 %637 }
 0x105   :  { %932 = vtanh.f32 %v317_v56  ;;  %v664_v52 = vmul.f32 %v1265_v39, %v638_v50  ;;  %v665_v25 = vmul.f32 %v1267_v20, %v638_v50  ;;  %v267_v39 = vmul.f32 %v1263_v38, %v1343_v15 }
 0x106   :  { %934 = vtanh.f32 %v710_v32  ;;  %v668_v20 = vadd.f32 %v660_v21, %v1324_v35 }
 0x107   :  { %v672_v60 = vadd.f32 %v664_v52, %v622_v51  ;;  %v673_v19 = vadd.f32 %v665_v25, %v623_v8  ;;  %936 = vtanh.f32 %v711_v29  ;;  %v275_v48 = vadd.f32 %v267_v39, %v225_v62 }
 0x108   :  { %938 = vtanh.f32 %v320_v4 }
 0x109   :  { %v1412_v59 = vadd.f32 %v700_v16, %v672_v60  ;;  %v1414_v40 = vadd.f32 %v700_v16, %v673_v19  ;;  %v690_v49 = vpop.permute.xlu1 %689  ;;  %940 = vtanh.f32 %v321_v22 }
 0x10a   :  { %v927_v37 = vpop.eup %926  ;;  %v1416_v46 = vadd.f32 %v690_v49, %v668_v20  ;;  %v1418_v0 = vadd.f32 %v690_v49, %v669_v53 }
 0x10b   :  { %v929_v38 = vpop.eup %928  ;;  %v716_v35 = vmul.f32 0.5, %v1412_v59  ;;  %v330_v15 = vmul.f32 0.5, %v927_v37  ;;  %v717_v41 = vmul.f32 0.5, %v1414_v40 }
 0x10c   :  { %v712_v55 = vmul.f32 0.5, %v1416_v46  ;;  %v713_v28 = vmul.f32 0.5, %v1418_v0  ;;  %v331_v14 = vmul.f32 0.5, %v929_v38 }
 0x10d   :  { %v299_v34 = vpop.permute.xlu1 %298  ;;  %942 = vtanh.f32 %v716_v35  ;;  %v338_v62 = vadd.f32 0.5, %v330_v15 }
 0x10e   :  { %v931_v1 = vpop.eup %930  ;;  %v1425_v10 = vadd.f32 %v299_v34, %v274_v45  ;;  %v1427_v12 = vadd.f32 %v299_v34, %v275_v48  ;;  %944 = vtanh.f32 %v712_v55  ;;  %v339_v56 = vadd.f32 0.5, %v331_v14 }
 0x10f   :  { %v933_v47 = vpop.eup %932  ;;  %v332_v13 = vmul.f32 0.5, %v931_v1  ;;  %946 = vtanh.f32 %v713_v28  ;;  %v346_v24 = vmul.f32 %v338_v62, %v1359_v27 }
 0x110   :  { %v318_v21 = vmul.f32 0.5, %v1425_v10  ;;  %v319_v30 = vmul.f32 0.5, %v1427_v12  ;;  %v333_v51 = vmul.f32 0.5, %v933_v47  ;;  %948 = vtanh.f32 %v717_v41  ;;  %v935_v8 = vpop.eup %934 }
 0x111   :  { %v695_v17 = vpop.permute.xlu1 %694  ;;  %v340_v6 = vadd.f32 0.5, %v332_v13  ;;  %v937_v18 = vpop.eup %936  ;;  %v347_v25 = vmul.f32 %v339_v56, %v1361_v11  ;;  %v726_v23 = vmul.f32 0.5, %v935_v8 }
 0x112   :  { %950 = vtanh.f32 %v318_v21  ;;  %v1432_v32 = vadd.f32 %v695_v17, %v670_v3  ;;  %v1434_v57 = vadd.f32 %v695_v17, %v671_v42  ;;  %v341_v54 = vadd.f32 0.5, %v333_v51  ;;  %v939_v36 = vpop.eup %938 }
 0x113   :  { %952 = vtanh.f32 %v319_v30  ;;  %v348_v9 = vmul.f32 %v340_v6, %v1372_v31  ;;  %v941_v4 = vpop.eup %940  ;;  %v727_v58 = vmul.f32 0.5, %v937_v18  ;;  %v336_v31 = vmul.f32 0.5, %v939_v36  ;;  %v52_v6 = vld [vmem:[%s1481_s5] sm:$0xf]  ;;  %s1003_s5 = smov [#allocation5]  }
 0x114   :  { %v714_v50 = vmul.f32 0.5, %v1432_v32  ;;  %v715_v52 = vmul.f32 0.5, %v1434_v57  ;;  %v349_v26 = vmul.f32 %v341_v54, %v1374_v33  ;;  %v734_v19 = vadd.f32 0.5, %v726_v23  ;;  %s851_s10 = sshll.u32 %s1003_s5, 4  ;;  %s852_s10 = int_to_ptr.vmem [resolvable:$true] %s851_s10 }
 0x115   :  { %v871_v29 = vpack.c.bf16 %v348_v9, %v346_v24  ;;  %v337_v20 = vmul.f32 0.5, %v941_v4  ;;  %v735_v33 = vadd.f32 0.5, %v727_v58  ;;  %v344_v49 = vadd.f32 0.5, %v336_v31  ;;  %v1515_v24 = vld [vmem:[#allocation9_spill] sm:$0xff]  ;;  %v439_v23 = vpop.permute.xlu1 %438  ;;  %v1519_v4 = vld [vmem:[#allocation10_spill] sm:$0xff]  ;;  %s970_s11 = scalar_lea.vmem %s852_s10, 256  ;;  %p975_p6 = scmp.lt.s32.totalorder %s852_s10, %s852_s10 }
 0x116   :  { %954 = vtanh.f32 %v714_v50  ;;  %v869_v61 = vpack.c.bf16 %v349_v26, %v347_v25  ;;  %v742_v35 = vmul.f32 %v734_v19, %v1370_v63  ;;  %v1517_v25 = vld [vmem:[#allocation8_spill] sm:$0xff]  ;;  %v1520_v31 = vld [vmem:[#allocation13_spill] sm:$0xff]  ;;  %p971_p5 = scmp.ne.s32.totalorder %s852_s10, %s970_s11  ;;  %p976_p7 = scmp.lt.s32.totalorder %s970_s11, %s970_s11 }
 0x117   :  { %956 = vtanh.f32 %v715_v52  ;;  %v943_v27 = vpop.eup %942  ;;  %v345_v28 = vadd.f32 0.5, %v337_v20  ;;  %v743_v41 = vmul.f32 %v735_v33, %v1382_v44  ;;  %v352_v47 = vmul.f32 %v344_v49, %v1388_v5  ;;  %v1521_v33 = vld [vmem:[#allocation11_spill] sm:$0xff] }
 0x118   :  { %870 = vmatprep.subr.bf16.mxu0 %v869_v61  ;;  %v945_v60 = vpop.eup %944  ;;  %v732_v45 = vmul.f32 0.5, %v943_v27  ;;  %v1518_v26 = vsub.f32 0.0, %v1517_v25  ;;  %p977_p8 = por %p976_p7, %p975_p6 }
 0x119   :  { %872 = vmatpush1.bf16.msra.mxu0 %v871_v29  ;;  %v947_v16 = vpop.eup %946  ;;  %v728_v39 = vmul.f32 0.5, %v945_v60  ;;  %v353_v51 = vmul.f32 %v345_v28, %v1397_v2  ;;  %v1516_v2 = vsub.f32 0.0, %v1515_v24 }
 0x11a   :  { %v949_v11 = vpop.eup %948  ;;  %v729_v53 = vmul.f32 0.5, %v947_v16  ;;  %v740_v21 = vadd.f32 0.5, %v732_v45  ;;  %v750_v36 = vmul.f32 %v1518_v26, %v52_v6  ;;  %v834_v16 = vpop.permute.xlu0 %833  ;;  %p978_p9 = pnand %p977_p8, %p971_p5 }
 0x11b   :  { %v736_v7 = vadd.f32 0.5, %v728_v39  ;;  %v733_v48 = vmul.f32 0.5, %v949_v11  ;;  %v354_v9 = vmul.f32 %v1516_v2, %v52_v6 }
 0x11c   :  { %v951_v22 = vpop.eup %950  ;;  %v737_v38 = vadd.f32 0.5, %v729_v53  ;;  %v748_v54 = vmul.f32 %v740_v21, %v1412_v59  ;;  %v1002_v59 = vmov 839922192  }
 0x11d   :  { %v953_v37 = vpop.eup %952  ;;  %v334_v43 = vmul.f32 0.5, %v951_v22  ;;  %v744_v55 = vmul.f32 %v736_v7, %v1416_v46  ;;  %v741_v17 = vadd.f32 0.5, %v733_v48 }
 0x11e   :  { %v335_v15 = vmul.f32 0.5, %v953_v37  ;;  %v745_v34 = vmul.f32 %v737_v38, %v1418_v0 }
 0x11f   :  { %v342_v14 = vadd.f32 0.5, %v334_v43  ;;  %v879_v42 = vpack.c.bf16 %v744_v55, %v742_v35  ;;  %v749_v18 = vmul.f32 %v741_v17, %v1414_v40 }
 0x120   :  { %v955_v3 = vpop.eup %954  ;;  %v343_v1 = vadd.f32 0.5, %v335_v15  ;;  %v877_v62 = vpack.c.bf16 %v745_v34, %v743_v41 }
 0x121   :  { %v957_v56 = vpop.eup %956  ;;  %v350_v13 = vmul.f32 %v342_v14, %v1425_v10  ;;  %v730_v63 = vmul.f32 0.5, %v955_v3 }
 0x122   :  { %v351_v46 = vmul.f32 %v343_v1, %v1427_v12  ;;  %v731_v30 = vmul.f32 0.5, %v957_v56  ;;  %878 = vmatprep.subr.bf16.mxu1 %v877_v62 }
 0x123   :  { %v738_v44 = vadd.f32 0.5, %v730_v63  ;;  %v875_v0 = vpack.c.bf16 %v352_v47, %v350_v13  ;;  %880 = vmatpush1.bf16.msra.mxu1 %v879_v42 }
 0x124   :  { %v739_v5 = vadd.f32 0.5, %v731_v30  ;;  %v873_v8 = vpack.c.bf16 %v353_v51, %v351_v46 }
 0x125   :  { %v746_v10 = vmul.f32 %v738_v44, %v1432_v32  ;;  %v441_v32 = vunpack.c.l.s4 %v1002_v59 }
 0x126   :  { %v747_v12 = vmul.f32 %v739_v5, %v1434_v57  ;;  %874 = vmatprep.subr.bf16.mxu0 %v873_v8 }
 0x127   :  { %876 = vmatpush1.bf16.msra.mxu0 %v875_v0  ;;  %v883_v50 = vpack.c.bf16 %v748_v54, %v746_v10  ;;  %v442_v57 = vunpack.c.0.s8 %v441_v32 }
 0x128   :  { %v881_v52 = vpack.c.bf16 %v749_v18, %v747_v12 }
 0x129   :  { %v445_v58 = vsub.s32 %v442_v57, %v1519_v4 }
 0x12a   :  { %864 = vmatmul.mubr.msk.f32.vlgmr.msra.gmra.mrb[0].mxu0 %vm355_vm4, %v354_v9  ;;  %882 = vmatprep.subr.bf16.mxu1 %v881_v52 }
 0x12b   :  { %884 = vmatpush1.bf16.msra.mxu1 %v883_v50  ;;  %v446_v27 = vrot.slane %v439_v23, %v445_v58  ;;  %v841_v53 = vrot.slane %v834_v16, %v445_v58 }
 0x12e   :  { %868 = vmatmul.mubr.msk.f32.vlgmr.msra.gmra.mrb[0].mxu1 %vm355_vm4, %v750_v36 }
 0x1fd   :  { %v425_v29 = vpop.f32.mrb[0].mxu0 }
 0x1fe   :  { %v427_v61 = vpop.f32.mrb[1].mxu0 }
 0x1ff   :  { %v432_v40 = vcombine.low %v425_v29, %v427_v61 }
 0x201   :  { %v434_v60 = vadd.f32 %v432_v40, %v1520_v31  ;;  %v820_v19 = vpop.f32.mrb[0].mxu1 }
 0x202   :  { %v822_v39 = vpop.f32.mrb[1].mxu1 }
 0x203   :  { %v448_v20 = vadd.f32 %v446_v27, %v434_v60  ;;  %v827_v11 = vcombine.low %v820_v19, %v822_v39 }
 0x205   :  { %449 = vst [vmem:[#allocation5] sm:$0xff] %v448_v20  ;;  %v829_v22 = vadd.f32 %v1521_v33, %v827_v11 }
 0x207   :  { %v843_v7 = vadd.f32 %v841_v53, %v829_v22 }
 0x209   :  { %845 = vst [vmem:[#allocation5 + $0x8] sm:$0xff] %v843_v7 }
 0x20a   :  { %981 = shalt.err (!%p978_p9)
}
 0x20b   :  { %s982_s14 = scalar_lea.hbm %s1483_s7, 256 }
 0x20c   :  { %p983_p10 = scmp.ne.s32.totalorder %s1483_s7, %s982_s14  ;;  %p986_p11 = scmp.lt.u32.totalorder %s982_s14, %s1483_s7 }
 0x20e   :  { %p988_p12 = pnand %p986_p11, %p983_p10 }
 0x210   :  { %991 = shalt.err (!%p988_p12)
}
 0x211   :  { %s1004_s18 = smov 128   ;;  %s1005_s19 = smov 8  }
 0x212   :  { %857 = dma.vmem_to_hbm [thread:$0]  %s852_s10, 256, %s1483_s7, [#allocation3], %s1004_s18, %s1004_s18, %s1005_s19  }
 0x213   :  { %994 = dma.done.wait [#allocation3], 256  }
 0x214   :  { %995 = vsyncadd [#allocation3], 4294967040 }
 0x215   :  { %861 = vsyncpa [#allocation3], 1 }
 0x216   :  { %862 = vsyncpa [#allocation4], 1 }

</bundles_post_ra>
